<compile_context>
chip_gen: v7x
topology: tpu7x:2x2x1
jax: 0.10.0
libtpu: 0.0.40
codegen_flags: <defaults>
</compile_context>

<pallas_src>
import functools
import numpy as np
import jax
import jax.numpy as jnp
from jax.experimental import pallas as pl
from jax.experimental.pallas import tpu as pltpu


# ---------------------------------------------------------------------------
# Static-permutation analysis
# ---------------------------------------------------------------------------
def _contiguous_runs(indices):
    """Group a static permutation into (out_start, in_start, length) runs."""
    idx = [int(i) for i in indices]
    runs = []
    i, n = 0, len(idx)
    while i < n:
        j = i + 1
        while j < n and idx[j] == idx[j - 1] + 1:
            j += 1
        runs.append((i, idx[i], j - i))
        i = j
    return tuple(runs)


def _is_identity(runs, nc):
    return runs == ((0, 0, nc),)


def _is_reversal(indices):
    nc = len(indices)
    return all(int(indices[i]) == nc - 1 - i for i in range(nc))


# ---------------------------------------------------------------------------
# Generation-aware tile sizing
# ---------------------------------------------------------------------------
def _vmem_capacity_bytes():
    try:
        info = pltpu.get_tpu_info()
        for name in ("vmem_capacity_bytes", "vmem_size_bytes", "vmem_bytes"):
            val = getattr(info, name, None)
            if val:
                return int(val)
    except Exception:
        pass
    return 64 << 20  # conservative default (v7x-sized VMEM)


def _sublane_quantum(dtype):
    bits = np.dtype(dtype).itemsize * 8
    return max(8, 256 // bits)  # 8 for 32-bit, 16 for 16-bit, 32 for 8-bit


def _round_up(x, m):
    return ((x + m - 1) // m) * m


def _pick_seq_tile(nb, nc, ns, dtype):
    """Pick the lane (sequence) tile size and a matching vmem_limit_bytes."""
    elem = np.dtype(dtype).itemsize
    nc_pad = _round_up(nc, _sublane_quantum(dtype))  # real sublane footprint
    cap = _vmem_capacity_bytes()
    # ~1/12 of physical VMEM per pipelined buffer (in+out, double buffered = 4
    # buffers), clamped to [2 MiB, 8 MiB]: v5e/v6e -> 8 MiB, v7x -> ~5.3 MiB.
    per_buf_budget = min(8 << 20, max(2 << 20, cap // 12))

    if ns <= 128:
        ns_t = ns  # tiny sequence: single full-dim block
    else:
        total_groups = pl.cdiv(ns, 128)
        bytes_per_group = nc_pad * 128 * elem
        budget_groups = max(1, per_buf_budget // bytes_per_group)
        # keep each per-channel HBM chunk >= ~2 KiB (>= 512 f32 lanes)
        min_groups = min(total_groups, max(1, pl.cdiv(2048 // elem, 128)))
        groups = min(total_groups, max(min_groups, budget_groups))
        # keep >= 4 grid steps so a 2-TensorCore chip (v7x) can shard the grid
        while nb * pl.cdiv(total_groups, groups) < 4 and groups > min_groups:
            groups = max(min_groups, groups // 2)
        # prefer an exact divisor close to the target (avoids the ragged block),
        # otherwise keep the 128-multiple tile and let Pallas mask the last block
        for g in range(groups, 0, -1):
            if total_groups % g == 0:
                if g >= max(min_groups, (groups + 1) // 2):
                    groups = g
                break
        ns_t = ns if groups >= total_groups else groups * 128

    footprint = nc_pad * _round_up(ns_t, 128) * elem  # real bytes per buffer
    vmem_limit = int(min(cap * 3 // 4, max(32 << 20, 4 * footprint + (16 << 20))))
    return ns_t, vmem_limit


# ---------------------------------------------------------------------------
# Kernels
# ---------------------------------------------------------------------------
def _copy_kernel(x_ref, o_ref):
    # identity permutation: one bulk tile copy
    o_ref[...] = x_ref[...]


def _make_runs_kernel(runs):
    """Fallback: permute channel rows via static contiguous-run copies."""
    def kernel(x_ref, o_ref):
        for out_s, in_s, length in runs:  # static Python unroll
            o_ref[out_s:out_s + length, :] = x_ref[in_s:in_s + length, :]
    return kernel


def _make_reverse_gather_kernel(nc):
    """Channel reversal as one sublane gather (indices built from iota)."""
    def kernel(x_ref, o_ref):
        x = x_ref[...]                                            # (nc, ns_t)
        row = jax.lax.broadcasted_iota(jnp.int32, x.shape, 0)
        idx = (nc - 1) - row
        o_ref[...] = jnp.take_along_axis(x, idx, axis=0,
                                         mode="promise_in_bounds")
    return kernel


def _shuffle_gather_kernel(idx_ref, x_ref, o_ref):
    """Arbitrary permutation as one sublane gather; indices are a tiny input."""
    x = x_ref[...]                                                # (nc, ns_t)
    idx = jax.lax.broadcast_in_dim(idx_ref[...], x.shape, (0, 1))
    o_ref[...] = jnp.take_along_axis(x, idx, axis=0, mode="promise_in_bounds")


# ---------------------------------------------------------------------------
# pallas_call builder + capability probe
# ---------------------------------------------------------------------------
def _build_call(kernel, *, nb, nc, ns, ns_t, dtype, vmem_limit, extra_in_specs=()):
    data_spec = pl.BlockSpec((None, nc, ns_t), lambda b, s: (b, 0, s))
    return pl.pallas_call(
        kernel,
        out_shape=jax.ShapeDtypeStruct((nb, nc, ns), dtype),
        grid=(nb, pl.cdiv(ns, ns_t)),
        in_specs=list(extra_in_specs) + [data_spec],
        out_specs=data_spec,
        compiler_params=pltpu.CompilerParams(
            dimension_semantics=("parallel", "parallel"),
            vmem_limit_bytes=vmem_limit),
        cost_estimate=pl.CostEstimate(
            flops=0, transcendentals=0,
            bytes_accessed=2 * nb * nc * ns * np.dtype(dtype).itemsize),
    )


_PROBE_CACHE = {}


def _lowers_and_compiles(fn, arg_specs):
    """One-time probe: does this pallas_call lower + compile on this TPU?"""
    try:
        jax.jit(fn).lower(
            *[jax.ShapeDtypeStruct(s, d) for s, d in arg_specs]).compile()
        return True
    except Exception:
        return False


# ---------------------------------------------------------------------------
# Public op
# ---------------------------------------------------------------------------
def permute_channels(z, indices):
    """Pallas implementation of z[:, indices, :] for a static permutation."""
    assert z.ndim == 3
    nb, nc, ns = z.shape
    assert len(indices) == nc
    dtype = z.dtype

    runs = _contiguous_runs(indices)
    ns_t, vmem_limit = _pick_seq_tile(nb, nc, ns, dtype)
    build = functools.partial(_build_call, nb=nb, nc=nc, ns=ns, ns_t=ns_t,
                              dtype=dtype, vmem_limit=vmem_limit)

    # ---- static path selection -------------------------------------------
    if _is_identity(runs, nc):
        return build(_copy_kernel)(z)

    runs_fn = build(_make_runs_kernel(runs))
    few_long_runs = len(runs) * 8 <= nc          # avg run >= 8 sublanes
    is_32bit = np.dtype(dtype).itemsize == 4

    if few_long_runs or not is_32bit:
        # TODO(synk): for bf16/int8 inputs, pack pairs/quads of sequence elements
        # into uint32 lanes (pltpu.bitcast) so the sublane-gather path applies and
        # every channel row stays a whole 32-bit sublane row (unmasked stores).
        return runs_fn(z)

    # In-VMEM sublane gather: permutation goes through the XLU, each tile ends
    # in a single bulk lane-dense store, kernel stays HBM-bandwidth bound.
    if _is_reversal(indices):
        gather_fn = build(_make_reverse_gather_kernel(nc))
        key = ("rev", nb, nc, ns, ns_t, str(np.dtype(dtype)))
        ok = _PROBE_CACHE.get(key)
        if ok is None:
            ok = _lowers_and_compiles(gather_fn, [((nb, nc, ns), dtype)])
            _PROBE_CACHE[key] = ok
        return gather_fn(z) if ok else runs_fn(z)

    idx = jnp.asarray(np.asarray(indices, dtype=np.int32).reshape(nc, 1))
    idx_spec = pl.BlockSpec((nc, 1), lambda b, s: (0, 0))
    gather_fn = build(_shuffle_gather_kernel, extra_in_specs=(idx_spec,))
    key = ("shuf", nb, nc, ns, ns_t, str(np.dtype(dtype)))
    ok = _PROBE_CACHE.get(key)
    if ok is None:
        ok = _lowers_and_compiles(
            gather_fn, [((nc, 1), jnp.int32), ((nb, nc, ns), dtype)])
        _PROBE_CACHE[key] = ok
    return gather_fn(idx, z) if ok else runs_fn(z)


# ---------------------------------------------------------------------------
# Module wrapper (mirrors the PyTorch Permutation1d)
# ---------------------------------------------------------------------------
class Permutation1d:
    def __init__(self, num_channels, shuffle=False, switch_flag=True):
        self.num_channels = num_channels
        indices = np.arange(num_channels - 1, -1, -1, dtype=np.int64)
        if shuffle:
            np.random.shuffle(indices)
        indices_inverse = np.zeros(num_channels, dtype=np.int64)
        for i in range(num_channels):
            indices_inverse[indices[i]] = i
        if (shuffle is False) and (switch_flag is True):
            indices = np.flip(indices).copy()
            indices_inverse = np.flip(indices_inverse).copy()
        self.indices = indices
        self.indices_inverse = indices_inverse

    def forward(self, z):
        assert z.ndim == 3
        return permute_channels(z, self.indices)

    def reverse(self, x):
        assert x.ndim == 3
        return permute_channels(x, self.indices_inverse)


def _ref_permute(z, indices):
    return z[:, jnp.asarray(np.asarray(indices, dtype=np.int32)), :]


# ---------------------------------------------------------------------------
# Self-test
# ---------------------------------------------------------------------------
if __name__ == "__main__":
    key = jax.random.PRNGKey(0)
    np.random.seed(0)

    nb, nc, ns = 2, 4, 16
    x = jax.random.normal(key, (nb, nc, ns), dtype=jnp.float32)

    # 1) default module (shuffle=False, switch_flag=True) -> identity (copy path)
    perm_id = Permutation1d(nc)
    out_id = jax.block_until_ready(perm_id.forward(x))
    assert out_id.shape == x.shape
    assert jnp.array_equal(out_id, _ref_permute(x, perm_id.indices))

    # 2) switch_flag=False -> channel reversal (sublane-gather path) + round trip
    perm_rev = Permutation1d(nc, shuffle=False, switch_flag=False)
    out_rev = jax.block_until_ready(perm_rev.forward(x))
    assert jnp.array_equal(out_rev, _ref_permute(x, perm_rev.indices))
    assert jnp.array_equal(jax.block_until_ready(perm_rev.reverse(out_rev)), x)

    # 3) shuffled permutation (gather path with an index operand) + round trip
    perm_shuf = Permutation1d(nc, shuffle=True)
    out_shuf = jax.block_until_ready(perm_shuf.forward(x))
    assert jnp.array_equal(out_shuf, _ref_permute(x, perm_shuf.indices))
    assert jnp.array_equal(jax.block_until_ready(perm_shuf.reverse(out_shuf)), x)

    # 4) lane-aligned shape exercising 128-multiple tiling + ragged last block
    #    (Ns=640 -> ns_t=512 so the grid keeps >= 4 steps; the last sequence
    #    block is partially out of bounds and store-masked by Pallas).
    x2 = jax.random.normal(jax.random.PRNGKey(0), (2, 8, 640), dtype=jnp.float32)
    perm2 = Permutation1d(8, shuffle=False, switch_flag=False)
    out2 = jax.block_until_ready(perm2.forward(x2))
    assert jnp.array_equal(out2, _ref_permute(x2, perm2.indices))

    # 5) non-32-bit dtype -> run-copy fallback path
    xb = x.astype(jnp.bfloat16)
    outb = jax.block_until_ready(perm_rev.forward(xb))
    assert jnp.array_equal(outb, _ref_permute(xb, perm_rev.indices))

    print("KERNEL_OK")
</pallas_src>

<mosaic_0001>
module attributes {stable_mosaic.version = 11 : i64} {
  func.func @_copy_kernel(%arg0: i32, %arg1: i32, %arg2: memref<1x4x16xf32, #tpu.memory_space<vmem>>, %arg3: memref<1x4x16xf32, #tpu.memory_space<vmem>>) attributes {dimension_semantics = [#tpu.dimension_semantics<parallel>, #tpu.dimension_semantics<parallel>], iteration_bounds = array<i64: 2, 1>, scalar_prefetch = 0 : i64, scratch_operands = 0 : i64, tpu.core_type = #tpu.core_type<tc>, window_params = [{transform_indices = @transform_0, window_bounds = array<i64: 1, 4, 16>}, {transform_indices = @transform_1, window_bounds = array<i64: 1, 4, 16>}]} {
    %c0 = arith.constant 0 : index
    %c0_0 = arith.constant 0 : index
    %c0_1 = arith.constant 0 : index
    %0 = vector.load %arg2[%c0, %c0_0, %c0_1] : memref<1x4x16xf32, #tpu.memory_space<vmem>>, vector<1x4x16xf32>
    %1 = vector.shape_cast %0 : vector<1x4x16xf32> to vector<4x16xf32>
    %c0_2 = arith.constant 0 : index
    %c0_3 = arith.constant 0 : index
    %c0_4 = arith.constant 0 : index
    %2 = vector.load %arg3[%c0_2, %c0_3, %c0_4] : memref<1x4x16xf32, #tpu.memory_space<vmem>>, vector<1x4x16xf32>
    %3 = vector.shape_cast %2 : vector<1x4x16xf32> to vector<4x16xf32>
    %4 = vector.shape_cast %1 : vector<4x16xf32> to vector<1x4x16xf32>
    tpu.vector_store %arg3[%c0_2, %c0_3, %c0_4], %4 {strides = array<i32>} : memref<1x4x16xf32, #tpu.memory_space<vmem>>, vector<1x4x16xf32>,
    return
  }
  func.func @transform_0(%arg0: i32, %arg1: i32) -> (i32, i32, i32) {
    %c0_i32 = arith.constant 0 : i32
    %c0_i32_0 = arith.constant 0 : i32
    return %arg0, %c0_i32, %arg1 : i32, i32, i32
  }
  func.func @transform_1(%arg0: i32, %arg1: i32) -> (i32, i32, i32) {
    %c0_i32 = arith.constant 0 : i32
    %c0_i32_0 = arith.constant 0 : i32
    return %arg0, %c0_i32, %arg1 : i32, i32, i32
  }
}

</mosaic_0001>

<bundles_post_ra>
// kernel: tpu_custom_call.1
= control target key start
LH: loop header
LB: loop body
LE: loop exit
PB: predicated region body
PF: predicated region fallthrough
CT: control target
= control target key end

     0   :  { %6 = vsyncpa [#allocation3], 0  ;;  %s620_s0 = inlined_call_operand.hbm [shape: f32[2,4,16], index: 0, kind: input, shape index: {}]   ;;  %s621_s1 = inlined_call_operand.hbm [shape: f32[2,4,16], index: 1, kind: output, shape index: {}]  }
   0x1   :  { %8 = vsyncpa [#allocation3 + $0x1], 0 }
   0x2   :  { %9 = vsyncpa [#allocation4], 0 }
   0x3   :  { %11 = vsyncpa [#allocation4 + $0x1], 0  ;;  %s448_s6 = smov 0   ;;  %s450_s7 = smov 0  }
   0x4   :  { %s452_s8 = smov 0   ;;  %s454_s9 = smov 0  }
   0x5   :  { %s456_s10 = smov 0   ;;  %s458_s11 = smov 0  }
   0x6 LB: > { %s247_s12 = sadd.s32 4294967295, %s434_s11   ;;  %s248_s13 = sadd.s32 4294967294, %s434_s11   ;;  %s434_s11 = sphi %s458_s11, %s17_s11   ;;  %s430_s10 = sphi %s456_s10, %s637_s10   ;;  %s426_s9 = sphi %s454_s9, %s636_s9   ;;  %s422_s8 = sphi %s452_s8, %s635_s8   ;;  %s418_s7 = sphi %s450_s7, %s634_s7   ;;  %s414_s6 = sphi %s448_s6, %s633_s6  }
   0x7   : > { %s29_s14 = sadd.s32 1, %s430_s10  ;;  %s38_s15 = sadd.s32 1, %s422_s8 }
   0x8   : > { %p31_p0 = scmp.ge.s32.totalorder %s29_s14, 2  ;;  %p45_p1 = scmp.ne.s32.totalorder %s422_s8, %s418_s7 }
   0x9   : > { %p46_p2 = scmp.eq.s32.totalorder %s434_s11, 0  ;;  %p51_p3 = scmp.ne.s32.totalorder %s418_s7, %s414_s6 }
   0xa   : > { %s639_s14 = smov (%p31_p0, %s29_s14), 0  ;;  %p52_p5 = scmp.eq.s32.totalorder %s247_s12, 0 }
   0xb   : > { %p489_p4 = por %p46_p2, %p45_p1  ;;  %s33_s17 = ssub.s32 %s430_s10, %s639_s14 }
   0xc   : > { %p77_p6 = scmp.eq.s32.totalorder %s247_s12, 1  ;;  %p36_p7 = scmp.eq.s32.totalorder %s33_s17, 0 }
   0xd   : > { %p495_p8 = por %p52_p5, %p51_p3  ;;  %p83_p10 = scmp.eq.s32.totalorder %s248_s13, 1 }
   0xe   : > { %p499_p9 = por %p77_p6, %p45_p1  ;;  %p272_p13 = scmp.lt.s32.totalorder %s434_s11, 2 }
   0xf   : > { %s504_s20 = scalar_select %p36_p7, %s422_s8, %s38_s15  }
  0x10   : > { %s625_s19 = scalar_select %p499_p9, 1, 0 }
  0x11   : > { %p506_p11 = por %p83_p10, %p51_p3  ;;  %s103_s22 = sand.u32 1, %s422_s8  }
  0x12   : > { %s251_s23 = sshll.u32 %s103_s22, 2  ;;  %s252_s24 = sshll.u32 %s430_s10, 6 }
  0x13   : > { %s626_s21 = scalar_select %p506_p11, 1, 0 }
  0x14   : > { %s517_s27 = scalar_lea.hbm %s620_s0, %s252_s24  ;;  %s107_s28 = scalar_lea.vmem [#allocation2], %s251_s23 }
  0x15   : > { %s115_s29 = sshll.u32 %s107_s28, 4  ;;  %p523_p0 = pnand %p272_p13, %p489_p4  ;;  %s519_s29 = int_to_ptr.vmem [resolvable:$true] %s115_s29 }
  0x16   : > { %s104_s2 = scalar_lea.sflag [#allocation3], %s103_s22  ;;  %s322_s3 = scalar_lea.hbm %s517_s27, 64 }
  0x17   : > { %p323_p3 = scmp.ne.s32.totalorder %s517_s27, %s322_s3  ;;  %p324_p5 = pneg %p523_p0 }
  0x18   : > { %s327_s12 = scalar_lea.hbm %s620_s0, 128  ;;  %p328_p4 = scmp.lt.u32.totalorder %s517_s27, %s620_s0 }
  0x19   : > { %p325_p6 = pnand %p324_p5, %p323_p3  ;;  %p329_p10 = scmp.lt.u32.totalorder %s327_s12, %s322_s3 }
  0x1a   : > { %p331_p12 = scmp.lt.u32.totalorder %s322_s3, %s517_s27 }
  0x1b   : > { %p326_p7 = pneg %p325_p6  ;;  %p330_p13 = por %p329_p10, %p328_p4 }
  0x1d   : > { %p332_p1 = por %p331_p12, %p330_p13 }
  0x1f   : > { %p333_p2 = pnand %p332_p1, %p326_p7 }
  0x21   : > { %336 = shalt.err (!%p333_p2)
}
  0x22   : > { %s337_s16 = scalar_lea.vmem %s519_s29, 64  ;;  %s436_s17 = smov [#allocation2]  }
  0x23   : > { %p338_p3 = scmp.ne.s32.totalorder %s519_s29, %s337_s16  ;;  %s342_s22 = sshll.u32 %s436_s17, 4  ;;  %s343_s22 = int_to_ptr.vmem [resolvable:$false] %s342_s22 }
  0x24   : > { %s344_s23 = scalar_lea.vmem %s343_s22, 128  ;;  %p345_p9 = scmp.lt.s32.totalorder %s519_s29, %s343_s22 }
  0x25   : > { %p340_p6 = pnand %p338_p3, %p324_p5  ;;  %p346_p4 = scmp.lt.s32.totalorder %s344_s23, %s337_s16 }
  0x27   : > { %p341_p11 = pneg %p340_p6  ;;  %p347_p10 = por %p346_p4, %p345_p9 }
  0x29   : > { %p348_p12 = pnand %p347_p10, %p341_p11 }
  0x2b   : > { %351 = shalt.err (!%p348_p12)
}
  0x2c   : > { %267 = dma.hbm_to_vmem [thread:$0]  (!%p523_p0), %s517_s27, 64, %s519_s29, %s104_s2  }
  0x2d   : > { %p628_p1 = scmp.lt.s32.totalorder %s434_s11, 3  ;;  %p629_p2 = scmp.ge.s32.totalorder %s434_s11, 1 }
  0x2f   : > { %p121_p5 = pnand %p629_p2, %p628_p1 }
  0x30   : > { %s559_s24 = sand.u32 (!%p121_p5), 1, %s418_s7  }
  0x31   : > { %124 = sbr.rel (%p121_p5) target bundleno = 83 (0x53), region = 24  ;;  %s254_s25 = sshll.u32 (!%p121_p5), %s559_s24, 2 }
  0x32   : > { %s127_s26 = scalar_lea.sflag (!%p121_p5), [#allocation3], %s559_s24  ;;  %s130_s28 = scalar_lea.vmem (!%p121_p5), [#allocation2], %s254_s25 }
  0x38   : > { %405 = dma.done.wait (%p495_p8), %s127_s26, 64  }
  0x39   : > { %407 = vsyncadd (%p495_p8), %s127_s26, 4294967232  ;;  %s148_s27 = scalar_lea.vmem [#allocation5], %s254_s25  ;;  %s257_s30 = sshll.u32 %s426_s9, 6  ;;  %vm150_vm0 = vcmask 125952   ;;  %v149_v0 = vld [vmem:[%s130_s28] sm:$0xf] }
  0x3a   : > { %s167_s29 = sshll.u32 %s148_s27, 4  ;;  %s573_s4 = scalar_lea.hbm %s621_s1, %s257_s30  ;;  %151 = vst.msk [vmem:[%s148_s27] sm:$0xf] %vm150_vm0, %v149_v0  ;;  %s568_s29 = int_to_ptr.vmem [resolvable:$true] %s167_s29 }
  0x3b   : > { %s153_s18 = scalar_lea.sflag [#allocation4], %s559_s24  ;;  %s352_s5 = scalar_lea.vmem %s568_s29, 64 }
  0x3c   : > { %p353_p8 = scmp.ne.s32.totalorder %s568_s29, %s352_s5  ;;  %p630_p9 = scmp.ne.s32.totalorder %s625_s19, 0 }
  0x3d   : > { %s437_s9 = smov [#allocation5]  }
  0x3e   : > { %p354_p11 = pnand %p353_p8, %p630_p9  ;;  %s356_s12 = sshll.u32 %s437_s9, 4  ;;  %s357_s12 = int_to_ptr.vmem [resolvable:$false] %s356_s12 }
  0x3f   : > { %s358_s13 = scalar_lea.vmem %s357_s12, 128  ;;  %p359_p7 = scmp.lt.s32.totalorder %s568_s29, %s357_s12 }
  0x40   : > { %p355_p0 = pneg %p354_p11  ;;  %p360_p13 = scmp.lt.s32.totalorder %s358_s13, %s352_s5 }
  0x42   : > { %p361_p3 = por %p360_p13, %p359_p7 }
  0x44   : > { %p362_p6 = pnand %p361_p3, %p355_p0 }
  0x46   : > { %365 = shalt.err (!%p362_p6)
}
  0x47   : > { %s366_s15 = scalar_lea.hbm %s573_s4, 64  ;;  %s370_s22 = scalar_lea.hbm %s621_s1, 128 }
  0x48   : > { %p367_p4 = scmp.ne.s32.totalorder %s573_s4, %s366_s15  ;;  %p371_p1 = scmp.lt.u32.totalorder %s573_s4, %s621_s1 }
  0x49   : > { %p372_p2 = scmp.lt.u32.totalorder %s370_s22, %s366_s15  ;;  %p374_p8 = scmp.lt.u32.totalorder %s366_s15, %s573_s4 }
  0x4a   : > { %p368_p10 = pnand %p367_p4, %p630_p9 }
  0x4b   : > { %p373_p5 = por %p372_p2, %p371_p1 }
  0x4c   : > { %p369_p12 = pneg %p368_p10 }
  0x4d   : > { %p375_p11 = por %p374_p8, %p373_p5 }
  0x4f   : > { %p376_p0 = pnand %p375_p11, %p369_p12 }
  0x51   : > { %379 = shalt.err (!%p376_p0)
}
  0x52   : > { %262 = dma.vmem_to_hbm [thread:$0]  (%p630_p9), %s568_s29, 64, %s573_s4, %s153_s18  }
  0x53 PF: > { %s179_s25 = sand.u32 1, %s414_s6   ;;  %p631_p7 = scmp.ne.s32.totalorder %s626_s21, 0 }
  0x54   : > { %p632_p13 = scmp.ge.s32.totalorder %s434_s11, 2  ;;  %s180_s26 = scalar_lea.sflag [#allocation4], %s179_s25 }
  0x56   : > { %p269_p3 = pnand %p632_p13, %p631_p7 }
  0x58   : > { %409 = dma.done.wait (!%p269_p3), %s180_s26, 64  }
  0x59   : > { %411 = vsyncadd (!%p269_p3), %s180_s26, 4294967232  ;;  %s17_s11 = sadd.s32 1, %s434_s11   ;;  %s633_s6 = smov %s418_s7 }
  0x5a   : > { %p14_p6 = scmp.ge.s32.totalorder %s17_s11, 4   ;;  %s634_s7 = smov %s422_s8 }
  0x5b   : > { %s635_s8 = smov %s504_s20  ;;  %s636_s9 = smov %s430_s10 }
  0x5c   : > { %s637_s10 = smov %s639_s14  ;;  %16 = sbr.rel (!%p14_p6) target bundleno = 6 (0x6), region = 69 }
  0x63   :  { %185 = vsyncpa [#allocation3], 1 }
  0x64   :  { %187 = vsyncpa [#allocation3 + $0x1], 1 }
  0x65   :  { %188 = vsyncpa [#allocation4], 1 }
  0x66   :  { %190 = vsyncpa [#allocation4 + $0x1], 1 }

</bundles_post_ra>
